<compile_context>
chip_gen: v6e
topology: v6e:2x2x1
jax: 0.10.0
libtpu: 0.0.40
codegen_flags: <defaults>
</compile_context>

<pallas_src>
import jax
import jax.numpy as jnp
from jax.experimental import pallas as pl
from jax.experimental.pallas import tpu as pltpu


# --------------------------- Pallas kernels ----------------------------------
def hs_bias_kernel(emb_ref, w_h_ref, b_n_ref, Wc_ref, out_ref):
    """Per-batch hs bias: out[b] = tanh(w_h . emb[b] + b_n) @ (W_hs @ W_L1[2H:])."""
    f32 = jnp.float32
    emb_b = emb_ref[0]                                        # (L, H)
    hs = jnp.tanh(
        jnp.dot(w_h_ref[...], emb_b, preferred_element_type=f32)  # (1, H)
        + b_n_ref[...])
    out_ref[0] = jnp.dot(hs, Wc_ref[...], preferred_element_type=f32)  # (1, H)


def head_kernel(lhs_ref, emb_ref, hsb_ref, Wa_ref, Wb_ref,
                bL1_ref, WL2_ref, bL2_ref, out_ref):
    """One (batch b, seq tile l) step of the classification head."""
    f32 = jnp.float32
    lhs = lhs_ref[0]                                          # (TILE_L, H)
    emb = emb_ref[0]                                          # (TILE_L, H)

    # Fused: lhs@W_h@W1a + emb@W_e@W1b + (hs@W_hs@W1c) + b_L1  -> 2 MXU passes.
    pre = (jnp.dot(lhs, Wa_ref[...], preferred_element_type=f32)
           + jnp.dot(emb, Wb_ref[...], preferred_element_type=f32)
           + hsb_ref[0]                                       # (1, H) row bias
           + bL1_ref[...])                                    # (TILE_L, H)
    L1 = jnp.maximum(pre, 0.0)

    # Class-1 softmax probability only (exact divide; C is tiny).
    Z = jnp.dot(L1, WL2_ref[...], preferred_element_type=f32) + bL2_ref[...]
    m = jnp.max(Z, axis=-1, keepdims=True)
    e = jnp.exp(Z - m)
    p1 = e[:, 1:2] / jnp.sum(e, axis=-1, keepdims=True)       # (TILE_L, 1)

    out_ref[...] = p1[None]                                   # (1, TILE_L, 1)


# ------------------------------ wrapper ---------------------------------------
def my_bert_head(lhs, emb, params):
    """lhs, emb: (B, L, H) float32.  Returns (B, L) float32."""
    B, L, H = lhs.shape
    C = params["W_L2"].shape[1]
    hp = jax.lax.Precision.HIGHEST

    # One-time weight fusion (constant-foldable under jit): halves the hot-path
    # MXU work and in-kernel HxH weight traffic.
    Wa = jnp.matmul(params["W_h"], params["W_L1"][:H], precision=hp)
    Wb = jnp.matmul(params["W_e"], params["W_L1"][H:2 * H], precision=hp)
    Wc = jnp.matmul(params["W_hs"], params["W_L1"][2 * H:], precision=hp)

    w_h2d = params["w_h"].reshape(1, L).astype(jnp.float32)
    b_n2d = params["b_n"].reshape(1, H).astype(jnp.float32)

    # --- micro-kernel: per-batch hs bias (B, 1, H), grid over B --------------
    hs_bias = pl.pallas_call(
        hs_bias_kernel,
        grid=(B,),
        in_specs=[
            pl.BlockSpec((1, L, H), lambda b: (b, 0, 0)),   # emb[b]
            pl.BlockSpec((1, L),    lambda b: (0, 0)),      # w_h (resident)
            pl.BlockSpec((1, H),    lambda b: (0, 0)),      # b_n (resident)
            pl.BlockSpec((H, H),    lambda b: (0, 0)),      # Wc  (resident)
        ],
        out_specs=pl.BlockSpec((1, 1, H), lambda b: (b, 0, 0)),
        out_shape=jax.ShapeDtypeStruct((B, 1, H), jnp.float32),
        compiler_params=pltpu.CompilerParams(
            dimension_semantics=("parallel",)),
    )(emb, w_h2d, b_n2d, Wc)

    # --- main head: grid over (batch, seq row tiles) --------------------------
    # At real shapes (L=512, H=768) TILE_L=128-256 keeps peak VMEM well under
    # v7x's 64 MiB with double-buffered activation tiles + resident weights.
    TILE_L = 128 if L % 128 == 0 else L
    n_l = L // TILE_L

    out = pl.pallas_call(
        head_kernel,
        grid=(B, n_l),
        in_specs=[
            pl.BlockSpec((1, TILE_L, H), lambda b, l: (b, l, 0)),  # lhs tile
            pl.BlockSpec((1, TILE_L, H), lambda b, l: (b, l, 0)),  # emb tile
            pl.BlockSpec((1, 1, H),      lambda b, l: (b, 0, 0)),  # hs bias[b]
            pl.BlockSpec((H, H),         lambda b, l: (0, 0)),     # Wa (resident)
            pl.BlockSpec((H, H),         lambda b, l: (0, 0)),     # Wb (resident)
            pl.BlockSpec((TILE_L, H),    lambda b, l: (l, 0)),     # b_L1 rows
            pl.BlockSpec((H, C),         lambda b, l: (0, 0)),     # W_L2 (resident)
            pl.BlockSpec((TILE_L, C),    lambda b, l: (l, 0)),     # b_L2 rows
        ],
        out_specs=pl.BlockSpec((1, TILE_L, 1), lambda b, l: (b, l, 0)),
        out_shape=jax.ShapeDtypeStruct((B, L, 1), jnp.float32),
        compiler_params=pltpu.CompilerParams(
            dimension_semantics=("parallel", "parallel"),
            vmem_limit_bytes=32 * 1024 * 1024),
    )(lhs, emb, hs_bias, Wa, Wb, params["b_L1"], params["W_L2"], params["b_L2"])

    return out[:, :, 0]


# --------------------------- pure-JAX reference -------------------------------
def reference_head(lhs, emb, p):
    hp = jax.lax.Precision.HIGHEST
    hs = jnp.tanh(jnp.einsum("blh,l->bh", emb, p["w_h"], precision=hp) + p["b_n"])
    hs = jnp.broadcast_to(hs[:, None, :], lhs.shape)
    h_f = jnp.concatenate(
        [jnp.matmul(lhs, p["W_h"], precision=hp),
         jnp.matmul(emb, p["W_e"], precision=hp),
         jnp.matmul(hs, p["W_hs"], precision=hp)], axis=-1)
    L1 = jax.nn.relu(jnp.matmul(h_f, p["W_L1"], precision=hp) + p["b_L1"][None])
    L2 = jax.nn.softmax(jnp.matmul(L1, p["W_L2"], precision=hp) + p["b_L2"][None],
                        axis=-1)
    return L2[:, :, 1]


# ------------------------- synthetic BERT outputs -----------------------------
def synth_bert(input_ids, emb_table, pos_table, enc_w):
    # TODO(synk): the pretrained 12-layer BERT encoder (and tokenizer) are not
    # reproducible here; its two used outputs are synthesized deterministically
    # from an embedding lookup + one dense transform (plain JAX glue).
    emb = emb_table[input_ids] + pos_table[None, :, :]        # outputs[2][0]
    last_hidden = jnp.tanh(emb @ enc_w)                       # outputs[0]
    return last_hidden, emb


# --------------------------------- main ---------------------------------------
if __name__ == "__main__":
    B, L, H, C = 2, 8, 128, 4          # batch, seq ("len"), hidden, class_size
    VOCAB = 64

    key = jax.random.PRNGKey(0)
    ks = jax.random.split(key, 16)
    u = lambda k, shape: jax.random.uniform(k, shape, jnp.float32, -0.1, 0.1)

    params = {
        "w_h":  u(ks[0], (L,)),
        "b_n":  u(ks[1], (H,)),
        "W_h":  u(ks[2], (H, H)),
        "W_e":  u(ks[3], (H, H)),
        "W_hs": u(ks[4], (H, H)),
        "W_L1": u(ks[5], (3 * H, H)),
        "b_L1": u(ks[6], (L, H)),
        "W_L2": u(ks[7], (H, C)),
        "b_L2": u(ks[8], (L, C)),
    }

    emb_table = jax.random.normal(ks[9], (VOCAB, H), jnp.float32) * 0.02
    pos_table = jax.random.normal(ks[10], (L, H), jnp.float32) * 0.02
    enc_w = jax.random.normal(ks[11], (H, H), jnp.float32) * (1.0 / jnp.sqrt(H))

    input_ids = jax.random.randint(ks[12], (B, L), 0, VOCAB)

    lhs, emb = synth_bert(input_ids, emb_table, pos_table, enc_w)

    out = my_bert_head(lhs, emb, params)
    out = jax.block_until_ready(out)

    ref = reference_head(lhs, emb, params)
    assert out.shape == (B, L)
    # Tolerance covers MXU f32-decomposition and EUP tanh/exp approximation
    # differences vs the HIGHEST-precision pure-JAX reference (well below the
    # ~1e-2 spread of the actual class probabilities).
    assert jnp.allclose(out, ref, atol=2e-3, rtol=2e-3), float(
        jnp.max(jnp.abs(out - ref)))

    print("KERNEL_OK")
</pallas_src>

<mosaic_0001>
module attributes {stable_mosaic.version = 11 : i64} {
  func.func @hs_bias_kernel(%arg0: i32, %arg1: memref<1x8x128xf32, #tpu.memory_space<vmem>>, %arg2: memref<1x8xf32, #tpu.memory_space<vmem>>, %arg3: memref<1x128xf32, #tpu.memory_space<vmem>>, %arg4: memref<128x128xf32, #tpu.memory_space<vmem>>, %arg5: memref<1x1x128xf32, #tpu.memory_space<vmem>>) attributes {dimension_semantics = [#tpu.dimension_semantics<parallel>], iteration_bounds = array<i64: 2>, scalar_prefetch = 0 : i64, scratch_operands = 0 : i64, tpu.core_type = #tpu.core_type<tc>, window_params = [{transform_indices = @transform_0, window_bounds = array<i64: 1, 8, 128>}, {pipeline_mode = #tpu.pipeline_mode<synchronous>, transform_indices = @transform_1, window_bounds = array<i64: 1, 8>}, {pipeline_mode = #tpu.pipeline_mode<synchronous>, transform_indices = @transform_2, window_bounds = array<i64: 1, 128>}, {pipeline_mode = #tpu.pipeline_mode<synchronous>, transform_indices = @transform_3, window_bounds = array<i64: 128, 128>}, {transform_indices = @transform_4, window_bounds = array<i64: 1, 1, 128>}]} {
    %c0 = arith.constant 0 : index
    %c0_0 = arith.constant 0 : index
    %c0_1 = arith.constant 0 : index
    %0 = vector.load %arg1[%c0, %c0_0, %c0_1] : memref<1x8x128xf32, #tpu.memory_space<vmem>>, vector<1x8x128xf32>
    %1 = vector.shape_cast %0 : vector<1x8x128xf32> to vector<8x128xf32>
    %c0_2 = arith.constant 0 : index
    %c0_3 = arith.constant 0 : index
    %2 = vector.load %arg2[%c0_2, %c0_3] : memref<1x8xf32, #tpu.memory_space<vmem>>, vector<1x8xf32>
    %cst = arith.constant dense<0.000000e+00> : vector<1x128xf32>
    %3 = tpu.matmul %2, %1, %cst {dimension_numbers = #tpu.dot_dimension_numbers<[1], [0], [0], [1], [0, 0, 1, 1], [], []>} : vector<1x8xf32>, vector<8x128xf32>, vector<1x128xf32> -> vector<1x128xf32>
    %c0_4 = arith.constant 0 : index
    %c0_5 = arith.constant 0 : index
    %4 = vector.load %arg3[%c0_4, %c0_5] : memref<1x128xf32, #tpu.memory_space<vmem>>, vector<1x128xf32>
    %5 = arith.addf %3, %4 : vector<1x128xf32>
    %6 = math.tanh %5 : vector<1x128xf32>
    %c0_6 = arith.constant 0 : index
    %c0_7 = arith.constant 0 : index
    %7 = vector.load %arg4[%c0_6, %c0_7] : memref<128x128xf32, #tpu.memory_space<vmem>>, vector<128x128xf32>
    %cst_8 = arith.constant dense<0.000000e+00> : vector<1x128xf32>
    %8 = tpu.matmul %6, %7, %cst_8 {dimension_numbers = #tpu.dot_dimension_numbers<[1], [0], [0], [1], [0, 0, 1, 1], [], []>} : vector<1x128xf32>, vector<128x128xf32>, vector<1x128xf32> -> vector<1x128xf32>
    %c0_9 = arith.constant 0 : index
    %c0_10 = arith.constant 0 : index
    %c0_11 = arith.constant 0 : index
    %9 = vector.load %arg5[%c0_9, %c0_10, %c0_11] : memref<1x1x128xf32, #tpu.memory_space<vmem>>, vector<1x1x128xf32>
    %10 = vector.shape_cast %9 : vector<1x1x128xf32> to vector<1x128xf32>
    %11 = vector.shape_cast %8 : vector<1x128xf32> to vector<1x1x128xf32>
    tpu.vector_store %arg5[%c0_9, %c0_10, %c0_11], %11 {strides = array<i32>} : memref<1x1x128xf32, #tpu.memory_space<vmem>>, vector<1x1x128xf32>,
    return
  }
  func.func @transform_0(%arg0: i32) -> (i32, i32, i32) {
    %c0_i32 = arith.constant 0 : i32
    %c0_i32_0 = arith.constant 0 : i32
    %c0_i32_1 = arith.constant 0 : i32
    return %arg0, %c0_i32, %c0_i32_0 : i32, i32, i32
  }
  func.func @transform_1(%arg0: i32) -> (i32, i32) {
    %c0_i32 = arith.constant 0 : i32
    %c0_i32_0 = arith.constant 0 : i32
    %c0_i32_1 = arith.constant 0 : i32
    return %c0_i32, %c0_i32_0 : i32, i32
  }
  func.func @transform_2(%arg0: i32) -> (i32, i32) {
    %c0_i32 = arith.constant 0 : i32
    %c0_i32_0 = arith.constant 0 : i32
    %c0_i32_1 = arith.constant 0 : i32
    return %c0_i32, %c0_i32_0 : i32, i32
  }
  func.func @transform_3(%arg0: i32) -> (i32, i32) {
    %c0_i32 = arith.constant 0 : i32
    %c0_i32_0 = arith.constant 0 : i32
    %c0_i32_1 = arith.constant 0 : i32
    return %c0_i32, %c0_i32_0 : i32, i32
  }
  func.func @transform_4(%arg0: i32) -> (i32, i32, i32) {
    %c0_i32 = arith.constant 0 : i32
    %c0_i32_0 = arith.constant 0 : i32
    %c0_i32_1 = arith.constant 0 : i32
    return %arg0, %c0_i32, %c0_i32_0 : i32, i32, i32
  }
}

</mosaic_0001>

<bundles_post_ra>
// kernel: tpu_custom_call.1
= control target key start
LH: loop header
LB: loop body
LE: loop exit
PB: predicated region body
PF: predicated region fallthrough
CT: control target
= control target key end

     0   :  { %9 = vsyncpa [#allocation3], 0  ;;  %s945_s0 = inlined_call_operand.hbm [shape: f32[2,8,128], index: 0, kind: input, shape index: {}]   ;;  %s946_s1 = inlined_call_operand.vmem [shape: f32[1,8], index: 1, kind: input, shape index: {}]   ;;  %s947_s2 = inlined_call_operand.vmem [shape: f32[1,128], index: 2, kind: input, shape index: {}]   ;;  %s948_s3 = inlined_call_operand.hbm [shape: f32[128,128], index: 3, kind: input, shape index: {}]   ;;  %s949_s4 = inlined_call_operand.hbm [shape: f32[2,1,128], index: 4, kind: output, shape index: {}]  }
   0x1   :  { %11 = vsyncpa [#allocation3 + $0x1], 0 }
   0x2   :  { %12 = vsyncpa [#allocation6], 0 }
   0x3   :  { %13 = vsyncpa [#allocation4], 0 }
   0x4   :  { %15 = vsyncpa [#allocation4 + $0x1], 0  ;;  %s772_s15 = smov 0   ;;  %s774_s16 = smov 0  }
   0x5   :  { %s776_s17 = smov 0   ;;  %s778_s18 = smov 0  }
   0x6 LB: > { %s793_s19 = sadd.s32 4294967295, %s738_s18   ;;  %s481_s20 = sadd.s32 4294967294, %s738_s18   ;;  %s738_s18 = sphi %s778_s18, %s971_s18   ;;  %s734_s17 = sphi %s776_s17, %s970_s17   ;;  %s730_s16 = sphi %s774_s16, %s969_s16   ;;  %s726_s15 = sphi %s772_s15, %s968_s15  }
   0x7   : > { %p41_p0 = scmp.ne.s32.totalorder %s730_s16, %s726_s15  ;;  %p950_p1 = scmp.eq.s32.totalorder %s793_s19, 0 }
   0x8   : > { %p134_p3 = scmp.eq.s32.totalorder %s481_s20, 1  ;;  %p482_p5 = scmp.ge.s32.totalorder %s738_s18, 1 }
   0x9   : > { %p802_p4 = por %p950_p1, %p41_p0  ;;  %p141_p7 = scmp.lt.s32.totalorder %s738_s18, 3 }
   0xa   : > { %p807_p6 = por %p134_p3, %p41_p0  ;;  %s740_s24 = smov [#allocation5]  }
   0xb   : > { %s954_s21 = scalar_select %p802_p4, 1, 0 }
   0xc   : > { %s955_s22 = scalar_select %p807_p6, 1, 0 }
   0xd   : > { %p812_p8 = pnand %p482_p5, %p141_p7  ;;  %s159_s25 = sshll.u32 %s740_s24, 4  ;;  %s160_s25 = int_to_ptr.vmem [resolvable:$true] %s159_s25 }
   0xe   : > { %s826_s27 = sadd.s32 1, %s738_s18   ;;  %s28_s28 = sadd.s32 1, %s734_s17 }
   0xf   : > { %s956_s23 = scalar_select %p812_p8, 1, 0 }
  0x10   : > { %p561_p9 = pneg %p812_p8  ;;  %s25_s29 = ssub.s32 %s738_s18, %s826_s27 }
  0x11   : > { %s627_s30 = scalar_lea.vmem %s160_s25, 2048  ;;  %p635_p5 = scmp.lt.s32.totalorder %s160_s25, %s160_s25 }
  0x12   : > { %p821_p11 = pnand %p561_p9, %p950_p1  ;;  %p628_p13 = scmp.ne.s32.totalorder %s160_s25, %s627_s30 }
  0x13   : > { %p636_p7 = scmp.lt.s32.totalorder %s627_s30, %s627_s30 }
  0x14   : > { %p618_p12 = pneg %p821_p11 }
  0x15   : > { %p637_p10 = por %p636_p7, %p635_p5 }
  0x16   : > { %p630_p0 = pnand %p628_p13, %p618_p12 }
  0x18   : > { %p631_p3 = pneg %p630_p0 }
  0x1a   : > { %p638_p2 = pnand %p637_p10, %p631_p3 }
  0x1c   : > { %641 = shalt.err (!%p638_p2)
}
  0x1d   : > { %s741_s5 = smov 128   ;;  %s742_s6 = smov 8  }
  0x1e   : > { %564 = dma.hbm_to_vmem [thread:$0]  (!%p821_p11), %s948_s3, 2048, %s160_s25, [#allocation6], %s741_s5, %s741_s5, %s742_s6  }
  0x1f   : > { %p26_p9 = scmp.eq.s32.totalorder %s25_s29, 0  ;;  %p35_p12 = scmp.ne.s32.totalorder %s734_s17, %s730_s16 }
  0x20   : > { %p36_p10 = scmp.eq.s32.totalorder %s738_s18, 0  ;;  %p574_p2 = scmp.lt.s32.totalorder %s738_s18, 2 }
  0x21   : > { %s843_s9 = scalar_select %p26_p9, %s734_s17, %s28_s28  }
  0x22   : > { %p37_p13 = por %p36_p10, %p35_p12  ;;  %p958_p0 = scmp.eq.s32.totalorder %s793_s19, 1 }
  0x23   : > { %s173_s11 = sand.u32 1, %s734_s17   ;;  %s486_s12 = sshll.u32 %s738_s18, 7 }
  0x24   : > { %p847_p3 = por %p958_p0, %p35_p12  ;;  %s485_s13 = sshll.u32 %s173_s11, 3 }
  0x25   : > { %s856_s24 = scalar_lea.hbm %s945_s0, %s486_s12  ;;  %s177_s25 = scalar_lea.vmem [#allocation2], %s485_s13 }
  0x26   : > { %s959_s10 = scalar_select %p847_p3, 1, 0 }
  0x27   : > { %s184_s26 = sshll.u32 %s177_s25, 4  ;;  %p858_p11 = pnand %p574_p2, %p37_p13  ;;  %s185_s26 = int_to_ptr.vmem [resolvable:$true] %s184_s26 }
  0x28   : > { %s174_s29 = scalar_lea.sflag [#allocation3], %s173_s11  ;;  %s642_s30 = scalar_lea.hbm %s856_s24, 128 }
  0x29   : > { %p643_p5 = scmp.ne.s32.totalorder %s856_s24, %s642_s30  ;;  %p644_p7 = pneg %p858_p11 }
  0x2a   : > { %s647_s7 = scalar_lea.hbm %s945_s0, 256  ;;  %p648_p10 = scmp.lt.s32.totalorder %s856_s24, %s945_s0 }
  0x2b   : > { %p645_p9 = pnand %p644_p7, %p643_p5  ;;  %p649_p2 = scmp.lt.s32.totalorder %s647_s7, %s642_s30 }
  0x2d   : > { %p646_p12 = pneg %p645_p9  ;;  %p650_p13 = por %p649_p2, %p648_p10 }
  0x2f   : > { %p651_p0 = pnand %p650_p13, %p646_p12 }
  0x31   : > { %654 = shalt.err (!%p651_p0)
}
  0x32   : > { %s655_s13 = scalar_lea.vmem %s185_s26, 128  ;;  %s743_s11 = smov [#allocation2]  }
  0x33   : > { %p656_p1 = scmp.ne.s32.totalorder %s185_s26, %s655_s13  ;;  %s660_s14 = sshll.u32 %s743_s11, 4  ;;  %s661_s14 = int_to_ptr.vmem [resolvable:$false] %s660_s14 }
  0x34   : > { %s662_s20 = scalar_lea.vmem %s661_s14, 256  ;;  %p663_p5 = scmp.lt.s32.totalorder %s185_s26, %s661_s14 }
  0x35   : > { %p658_p6 = pnand %p656_p1, %p644_p7  ;;  %p664_p9 = scmp.lt.s32.totalorder %s662_s20, %s655_s13 }
  0x37   : > { %p659_p3 = pneg %p658_p6  ;;  %p665_p4 = por %p664_p9, %p663_p5 }
  0x39   : > { %p666_p8 = pnand %p665_p4, %p659_p3 }
  0x3b   : > { %669 = shalt.err (!%p666_p8)
}
  0x3c   : > { %568 = dma.hbm_to_vmem [thread:$0]  (!%p858_p11), %s856_s24, 128, %s185_s26, %s174_s29  }
  0x3d   : > { %p961_p12 = scmp.ne.s32.totalorder %s956_s23, 0 }
  0x3e   : > { %s879_s25 = sand.u32 (!%p961_p12), 1, %s730_s16   ;;  %p962_p1 = scmp.ne.s32.totalorder (!%p961_p12), %s954_s21, 0 }
  0x3f   : > { %193 = sbr.rel (%p961_p12) target bundleno = 492 (0x1ec), region = 36  ;;  %s488_s30 = sshll.u32 (!%p961_p12), %s879_s25, 3 }
  0x40   : > { %s196_s5 = scalar_lea.sflag (!%p961_p12), [#allocation3], %s879_s25  ;;  %s199_s6 = scalar_lea.vmem (!%p961_p12), [#allocation2], %s488_s30 }
  0x44   : > { %713 = dma.done.wait (%p962_p1), %s196_s5, 128  }
  0x45   : > { %715 = vsyncadd (%p962_p1), %s196_s5, 4294967168  ;;  %p963_p4 = scmp.eq.s32.totalorder %s793_s19, 0 }
  0x47   : > { %717 = dma.done.wait (%p963_p4), [#allocation6], 2048   ;;  %p964_p6 = pmov %p963_p4 }
  0x48   : > { %v744_v0 = vmov 0.0   ;;  %vm745_vm0 = vmmov 0   ;;  %vm230_vm1 = vcmask 64512   ;;  %v227_v1 = vld [vmem:[%s199_s6] sm:$0xff]  ;;  %v318_v5 = vld [vmem:[#allocation5 + $0x68] sm:$0xff]  ;;  %v317_v6 = vld [vmem:[#allocation5 + $0x60] sm:$0xff] }
  0x49   : > { %719 = vsyncadd (%p964_p6), [#allocation6], 4294965248  ;;  %513 = vmatprep.subr.mxu0 %v744_v0  ;;  %515 = vmatprep.mubr.msk.f32.mxu0 %vm745_vm0, %v744_v0  ;;  %v228_v2 = vld [vmem:[%s946_s1] sm:$0x1]  ;;  %v320_v3 = vld [vmem:[#allocation5 + $0x78] sm:$0xff]  ;;  %s226_s28 = scalar_lea.vmem [#allocation7], %s879_s25 }
  0x4a   : > { %518 = vmatprep.subr.mxu1 %v744_v0  ;;  %550 = vmatprep.mubr.msk.f32.mxu1 %vm745_vm0, %v744_v0  ;;  %v319_v4 = vld [vmem:[#allocation5 + $0x70] sm:$0xff]  ;;  %v316_v7 = vld [vmem:[#allocation5 + $0x58] sm:$0xff]  ;;  %v314_v9 = vld [vmem:[#allocation5 + $0x48] sm:$0xff]  ;;  %s405_s29 = sshll.u32 %s226_s28, 4  ;;  %s491_s7 = sshll.u32 %s793_s19, 4  ;;  %s899_s29 = int_to_ptr.vmem [resolvable:$true] %s405_s29 }
  0x4b   : > { %514 = vmatpush3.msra.mxu0 %v227_v1  ;;  %519 = vmatpush3.msra.mxu1 %v320_v3  ;;  %v315_v8 = vld [vmem:[#allocation5 + $0x50] sm:$0xff]  ;;  %v313_v10 = vld [vmem:[#allocation5 + $0x40] sm:$0xff]  ;;  %v312_v11 = vld [vmem:[#allocation5 + $0x38] sm:$0xff]  ;;  %s904_s13 = scalar_lea.hbm %s949_s4, %s491_s7  ;;  %s393_s11 = scalar_lea.sflag [#allocation4], %s879_s25 }
  0x4c   : > { %516 = vmatmul.mubr.msk.f32.vlgmr.msra.gmra.mxu0 %vm230_vm1, %v228_v2  ;;  %520 = vmatprep.subr.mxu1 %v744_v0  ;;  %v311_v12 = vld [vmem:[#allocation5 + $0x30] sm:$0xff]  ;;  %v310_v13 = vld [vmem:[#allocation5 + $0x28] sm:$0xff]  ;;  %v309_v14 = vld [vmem:[#allocation5 + $0x20] sm:$0xff]  ;;  %s670_s14 = scalar_lea.vmem %s899_s29, 16  ;;  %p965_p3 = scmp.ne.s32.totalorder %s959_s10, 0 }
  0x4d   : > { %521 = vmatpush3.msra.mxu1 %v319_v4  ;;  %v308_v15 = vld [vmem:[#allocation5 + $0x18] sm:$0xff]  ;;  %v307_v16 = vld [vmem:[#allocation5 + $0x10] sm:$0xff]  ;;  %v306_v17 = vld [vmem:[#allocation5 + $0x8] sm:$0xff]  ;;  %p671_p8 = scmp.ne.s32.totalorder %s899_s29, %s670_s14  ;;  %s746_s19 = smov [#allocation7]  }
  0x4e   : > { %522 = vmatprep.subr.mxu1 %v744_v0  ;;  %v305_v18 = vld [vmem:[#allocation5] sm:$0xff]  ;;  %v229_v19 = vld [vmem:[%s947_s2] sm:$0x1]  ;;  %s674_s20 = sshll.u32 %s746_s19, 4  ;;  %s675_s20 = int_to_ptr.vmem [resolvable:$false] %s674_s20 }
  0x4f   : > { %523 = vmatpush3.msra.mxu1 %v318_v5  ;;  %p672_p11 = pnand %p671_p8, %p965_p3  ;;  %s676_s30 = scalar_lea.vmem %s675_s20, 32 }
  0x50   : > { %524 = vmatprep.subr.mxu1 %v744_v0  ;;  %p677_p10 = scmp.lt.s32.totalorder %s899_s29, %s675_s20  ;;  %p678_p2 = scmp.lt.s32.totalorder %s676_s30, %s670_s14 }
  0x51   : > { %525 = vmatpush3.msra.mxu1 %v317_v6  ;;  %p673_p7 = pneg %p672_p11 }
  0x52   : > { %526 = vmatprep.subr.mxu1 %v744_v0  ;;  %p679_p13 = por %p678_p2, %p677_p10 }
  0x53   : > { %527 = vmatpush3.msra.mxu1 %v316_v7 }
  0x54   : > { %528 = vmatprep.subr.mxu1 %v744_v0  ;;  %p680_p0 = pnand %p679_p13, %p673_p7 }
  0x55   : > { %529 = vmatpush3.msra.mxu1 %v315_v8 }
  0x56   : > { %530 = vmatprep.subr.mxu1 %v744_v0 }
  0x57   : > { %531 = vmatpush3.msra.mxu1 %v314_v9 }
  0x58   : > { %532 = vmatprep.subr.mxu1 %v744_v0 }
  0x59   : > { %533 = vmatpush3.msra.mxu1 %v313_v10 }
  0x5a   : > { %534 = vmatprep.subr.mxu1 %v744_v0 }
  0x5b   : > { %535 = vmatpush3.msra.mxu1 %v312_v11 }
  0x5c   : > { %536 = vmatprep.subr.mxu1 %v744_v0 }
  0x5d   : > { %537 = vmatpush3.msra.mxu1 %v311_v12 }
  0x5e   : > { %538 = vmatprep.subr.mxu1 %v744_v0 }
  0x5f   : > { %539 = vmatpush3.msra.mxu1 %v310_v13 }
  0x60   : > { %540 = vmatprep.subr.mxu1 %v744_v0 }
  0x61   : > { %541 = vmatpush3.msra.mxu1 %v309_v14 }
  0x62   : > { %542 = vmatprep.subr.mxu1 %v744_v0 }
  0x63   : > { %543 = vmatpush3.msra.mxu1 %v308_v15 }
  0x64   : > { %544 = vmatprep.subr.mxu1 %v744_v0 }
  0x65   : > { %545 = vmatpush3.msra.mxu1 %v307_v16 }
  0x66   : > { %546 = vmatprep.subr.mxu1 %v744_v0 }
  0x67   : > { %547 = vmatpush3.msra.mxu1 %v306_v17 }
  0x68   : > { %548 = vmatprep.subr.mxu1 %v744_v0 }
  0x69   : > { %549 = vmatpush3.msra.mxu1 %v305_v18 }
 0x10c   : > { %v300_v20 = vpop.f32.mrf.mxu0 }
 0x10d   : > { %v301_v21 = vadd.f32 %v300_v20, %v229_v19 }
 0x10e   : > { %v517_v22 = vpop.f32.mrf.mxu0 }
 0x10f   : > { %614 = vtanh.f32 %v301_v21 }
 0x11c   : > { %v615_v23 = vpop.eup %614 }
 0x11d   : > { %551 = vmatmul.mubr.f32.vlgmr.msra.gmra.mxu1 %v615_v23 }
 0x1dd   : > { %v387_v24 = vpop.f32.mrf.mxu1 }
 0x1de   : > { %391 = vst [vmem:[%s226_s28] sm:$0x1] %v387_v24 }
 0x1df   : > { %v552_v25 = vpop.f32.mrf.mxu1 }
 0x1e0   : > { %683 = shalt.err (!%p680_p0)
}
 0x1e1   : > { %s684_s5 = scalar_lea.hbm %s904_s13, 16  ;;  %s688_s23 = scalar_lea.hbm %s949_s4, 32 }
 0x1e2   : > { %p685_p5 = scmp.ne.s32.totalorder %s904_s13, %s684_s5  ;;  %p689_p1 = scmp.lt.s32.totalorder %s904_s13, %s949_s4 }
 0x1e3   : > { %p690_p4 = scmp.lt.s32.totalorder %s688_s23, %s684_s5 }
 0x1e4   : > { %p686_p9 = pnand %p685_p5, %p965_p3 }
 0x1e5   : > { %p691_p6 = por %p690_p4, %p689_p1 }
 0x1e6   : > { %p687_p12 = pneg %p686_p9 }
 0x1e8   : > { %p692_p8 = pnand %p691_p6, %p687_p12 }
 0x1ea   : > { %695 = shalt.err (!%p692_p8)
}
 0x1eb   : > { %559 = dma.vmem_to_hbm [thread:$0]  (%p965_p3), %s899_s29, 16, %s904_s13, %s393_s11  }
 0x1ec PF: > { %s417_s26 = sand.u32 1, %s726_s15   ;;  %p966_p11 = scmp.ne.s32.totalorder %s955_s22, 0 }
 0x1ed   : > { %p967_p7 = scmp.ge.s32.totalorder %s738_s18, 2  ;;  %s418_s28 = scalar_lea.sflag [#allocation4], %s417_s26 }
 0x1ef   : > { %p570_p10 = pnand %p967_p7, %p966_p11 }
 0x1f1   : > { %p571_p2 = pneg %p570_p10 }
 0x1f3   : > { %721 = dma.done.wait (%p571_p2), %s418_s28, 16  }
 0x1f4   : > { %723 = vsyncadd (%p571_p2), %s418_s28, 4294967280  ;;  %p18_p13 = scmp.ge.s32.totalorder %s826_s27, 4   ;;  %s968_s15 = smov %s730_s16 }
 0x1f5   : > { %s969_s16 = smov %s734_s17  ;;  %s970_s17 = smov %s843_s9 }
 0x1f6   : > { %s971_s18 = smov %s826_s27  ;;  %20 = sbr.rel (!%p18_p13) target bundleno = 6 (0x6), region = 85 }
 0x1fb   :  { %422 = vsyncpa [#allocation3], 1 }
 0x1fc   :  { %424 = vsyncpa [#allocation3 + $0x1], 1 }
 0x1fd   :  { %425 = vsyncpa [#allocation6], 1 }
 0x1fe   :  { %426 = vsyncpa [#allocation4], 1 }
 0x1ff   :  { %428 = vsyncpa [#allocation4 + $0x1], 1 }

</bundles_post_ra>
